<compile_context>
chip_gen: v6e
topology: v6e:2x2x1
jax: 0.10.0
libtpu: 0.0.40
codegen_flags: <defaults>
</compile_context>

<pallas_src>
import math
import functools

import jax
import jax.numpy as jnp
from jax import lax
from jax.experimental import pallas as pl
from jax.experimental.pallas import tpu as pltpu


# ----------------------------------------------------------------------------
# device-aware VMEM / tiling policy (review: raise the scoped VMEM limit on
# v5e/v6e, keep tiles modest on v7x).  Falls back to compiler defaults.
# ----------------------------------------------------------------------------
@functools.lru_cache(maxsize=None)
def _vmem_limit():
    try:
        cap = int(pltpu.get_tpu_info().vmem_capacity_bytes)
    except Exception:
        return None
    lim = min(cap - (16 << 20), 100 << 20)
    return lim if lim >= (32 << 20) else None


def _row_tile(R):
    lim = _vmem_limit()
    cap = 1024 if (lim or 0) >= (80 << 20) else 512    # big-VMEM chips: bigger rows
    if R <= cap:
        return R
    for t in (1024, 512, 256, 128, 64, 32, 16, 8):
        if t <= cap and R % t == 0:
            return t
    return R


# ============================================================================
# 1) fused residual-add + RMSNorm + projection
#    (mixer_norm -> in_proj and attn_norm -> qkv_proj; the normed hidden is
#     never written to HBM.)
# ============================================================================
def _add_norm_proj_kernel(eps, x_ref, res_ref, w_ref, wp_ref, y_ref, res_out_ref):
    xr = x_ref[...].astype(jnp.float32) + res_ref[...]
    res_out_ref[...] = xr
    var = jnp.mean(xr * xr, axis=-1, keepdims=True)
    normed = (xr * lax.rsqrt(var + eps) * w_ref[...]).astype(jnp.bfloat16)
    y_ref[...] = jnp.dot(normed, wp_ref[...],
                         preferred_element_type=jnp.float32).astype(y_ref.dtype)


def _norm_proj_kernel(eps, x_ref, w_ref, wp_ref, y_ref, res_out_ref):
    # residual is None: skip the add and the fp32 zeros DMA entirely.
    xr = x_ref[...].astype(jnp.float32)
    res_out_ref[...] = xr
    var = jnp.mean(xr * xr, axis=-1, keepdims=True)
    normed = (xr * lax.rsqrt(var + eps) * w_ref[...]).astype(jnp.bfloat16)
    y_ref[...] = jnp.dot(normed, wp_ref[...],
                         preferred_element_type=jnp.float32).astype(y_ref.dtype)


def add_norm_proj(x, residual, norm_w, w_proj, eps, out_dtype):
    """(x [+ residual]) -> RMSNorm -> @ w_proj (bf16 MXU), in one kernel.

    Returns (projected (B,T,N) in out_dtype, residual_out (B,T,D) fp32)."""
    B, T, D = x.shape
    R = B * T
    N = w_proj.shape[1]
    rt = _row_tile(R)
    assert R % rt == 0
    cp = pltpu.CompilerParams(dimension_semantics=("parallel",),
                              vmem_limit_bytes=_vmem_limit())
    out_shape = (jax.ShapeDtypeStruct((R, N), out_dtype),
                 jax.ShapeDtypeStruct((R, D), jnp.float32))
    out_specs = (pl.BlockSpec((rt, N), lambda i: (i, 0)),
                 pl.BlockSpec((rt, D), lambda i: (i, 0)))
    shared_specs = [pl.BlockSpec((1, D), lambda i: (0, 0)),
                    pl.BlockSpec((D, N), lambda i: (0, 0))]
    if residual is None:
        y, res_out = pl.pallas_call(
            functools.partial(_norm_proj_kernel, eps),
            out_shape=out_shape, grid=(R // rt,),
            in_specs=[pl.BlockSpec((rt, D), lambda i: (i, 0))] + shared_specs,
            out_specs=out_specs, compiler_params=cp,
        )(x.reshape(R, D), norm_w.reshape(1, D), w_proj)
    else:
        y, res_out = pl.pallas_call(
            functools.partial(_add_norm_proj_kernel, eps),
            out_shape=out_shape, grid=(R // rt,),
            in_specs=[pl.BlockSpec((rt, D), lambda i: (i, 0)),
                      pl.BlockSpec((rt, D), lambda i: (i, 0))] + shared_specs,
            out_specs=out_specs, compiler_params=cp,
        )(x.reshape(R, D), residual.reshape(R, D).astype(jnp.float32),
          norm_w.reshape(1, D), w_proj)
    return y.reshape(B, T, N), res_out.reshape(B, T, D)


# ============================================================================
# 2) RodimusFlow mixer core, sequence-tiled: grid = (B, T//Tb), batch parallel,
#    seq arbitrary.  Each grid step is one DDTS chunk; the DDTS state (Di, M)
#    and the conv tail (8, Di) are carried in VMEM scratch across the seq axis.
#    short conv + SiLU -> one concatenated gate projection -> chunk-parallel
#    DDTS recurrence -> gated RMSNorm -> out proj (all fused per chunk).
# ============================================================================
def _rodimus_mixer_kernel(eps, M, xg_ref, convw_ref, wcat_ref, wi2_ref,
                          onw_ref, wout_ref, o_ref, xpad_s, S_s):
    si = pl.program_id(1)
    Tb = xg_ref.shape[1]
    K = convw_ref.shape[0]
    r, Di = wi2_ref.shape
    PAD = 8                                                   # carried conv tail rows

    xg = xg_ref[0].astype(jnp.float32)                        # (Tb, 2*Di)
    x_raw = xg[:, :Di]
    g_gate = xg[:, Di:]                                       # output-gate branch

    # ---- reset carried state at the start of each sequence -------------------
    @pl.when(si == 0)
    def _():
        xpad_s[pl.ds(0, PAD), :] = jnp.zeros((PAD, Di), jnp.float32)
        S_s[...] = jnp.zeros_like(S_s)

    # ---- causal depthwise conv (K taps) + SiLU -------------------------------
    # Only the PAD state rows persist; the Tb data rows are overwritten each
    # step and never bulk-zeroed.
    xpad_s[pl.ds(PAD, Tb), :] = x_raw
    acc = jnp.zeros((Tb, Di), jnp.float32)
    for k in range(K):                                        # static tap unroll
        acc = acc + (xpad_s[pl.ds(PAD - (K - 1) + k, Tb), :]
                     * convw_ref[pl.ds(k, 1), :])
    x = acc * jax.nn.sigmoid(acc)                             # SiLU, (Tb, Di)
    # carry the last PAD input rows as conv state for the next seq block
    xpad_s[pl.ds(0, PAD), :] = xpad_s[pl.ds(Tb, PAD), :]

    # ---- one concatenated projection: [k | g | i_lowrank | tau] (bf16 MXU) ----
    xb = x.astype(jnp.bfloat16)
    proj = jnp.dot(xb, wcat_ref[...], preferred_element_type=jnp.float32)
    k_log = proj[:, :M]
    g_log = proj[:, M:2 * M]
    i_pre = proj[:, 2 * M:2 * M + r]
    tau_log = proj[:, 2 * M + r:2 * M + r + 1]

    tau = jax.nn.sigmoid(tau_log)                             # (Tb, 1) temperature
    i_log = jnp.dot(i_pre.astype(jnp.bfloat16), wi2_ref[...],
                    preferred_element_type=jnp.float32)       # fused low-rank gate
    kk = jax.nn.softmax(k_log, axis=-1)                       # shared normalized key
    la = tau * jax.nn.log_sigmoid(g_log)                      # log decay (<= 0)
    v = jax.nn.sigmoid(i_log) * x                             # input-gated values

    # ---- DDTS chunk (this grid step IS one chunk) -----------------------------
    # A_t = prod_{s<=t} a_s, K~_t = k_t A_t, W_s = b_s k_s / A_s.
    # y = K~ @ S0^T + tril(K~ W^T) @ V ; state S <- A_Tb * (S + V^T W).
    row = lax.broadcasted_iota(jnp.int32, (Tb, Tb), 0)
    col = lax.broadcasted_iota(jnp.int32, (Tb, Tb), 1)
    tril = (col <= row).astype(jnp.float32)                   # inclusive lower tri
    # cumulative log-decay kept in f32 (MXU f32 pass; precision matters here)
    L = jnp.dot(tril, la, preferred_element_type=jnp.float32)
    A = jnp.exp(L)
    Ainv = jnp.exp(-L)
    # TODO(synk): exp(-L) can overflow for very long chunks with strong decay;
    # keep scan_chunk <= 64 (or re-centre per chunk) before enlarging.
    exp_lc = jnp.exp(la)
    # TODO(synk): exp_lc is derivable from A via a sublane roll (A_t / A_{t-1})
    # to drop one EUP pass; kept explicit here for lowering robustness.
    kt = kk * A                                               # query-side keys
    w = (1.0 - exp_lc) * kk * Ainv                            # write-side keys

    ktb = kt.astype(jnp.bfloat16)
    wb = w.astype(jnp.bfloat16)
    vb = v.astype(jnp.bfloat16)
    Sb = S_s[...].astype(jnp.bfloat16)
    y_inter = lax.dot_general(ktb, Sb, (((1,), (1,)), ((), ())),
                              preferred_element_type=jnp.float32)      # (Tb, Di)
    P = lax.dot_general(ktb, wb, (((1,), (1,)), ((), ())),
                        preferred_element_type=jnp.float32) * tril     # (Tb, Tb)
    y_intra = jnp.dot(P.astype(jnp.bfloat16), vb,
                      preferred_element_type=jnp.float32)              # (Tb, Di)
    y = y_inter + y_intra

    a_last = A[Tb - 1:Tb, :]                                  # (1, M)
    vw = lax.dot_general(vb, (w * a_last).astype(jnp.bfloat16),
                         (((0,), (0,)), ((), ())),
                         preferred_element_type=jnp.float32)  # (Di, M)
    S_s[...] = S_s[...] * a_last + vw                         # carry across seq axis

    # ---- gated RMSNorm + output projection, fused into the chunk -------------
    var = jnp.mean(y * y, axis=-1, keepdims=True)
    normed = y * lax.rsqrt(var + eps) * onw_ref[...]
    o = normed * (g_gate * jax.nn.sigmoid(g_gate))            # SiLU output gate
    o_ref[0] = jnp.dot(o.astype(jnp.bfloat16), wout_ref[...],
                       preferred_element_type=jnp.float32).astype(o_ref.dtype)


def rodimus_mixer(xg, conv_w, w_cat, w_i2, out_norm_w, w_out, eps, M, chunk,
                  out_dtype):
    B, T, twoDi = xg.shape
    Di = twoDi // 2
    K = conv_w.shape[0]
    D = w_out.shape[1]
    Ncat = w_cat.shape[1]
    r = w_i2.shape[0]
    Tb = min(T, chunk)
    assert T % Tb == 0 and Tb % 8 == 0
    return pl.pallas_call(
        functools.partial(_rodimus_mixer_kernel, eps, M),
        out_shape=jax.ShapeDtypeStruct((B, T, D), out_dtype),
        grid=(B, T // Tb),
        in_specs=[pl.BlockSpec((1, Tb, twoDi), lambda b, s: (b, s, 0)),
                  pl.BlockSpec((K, Di), lambda b, s: (0, 0)),
                  pl.BlockSpec((Di, Ncat), lambda b, s: (0, 0)),
                  pl.BlockSpec((r, Di), lambda b, s: (0, 0)),
                  pl.BlockSpec((1, Di), lambda b, s: (0, 0)),
                  pl.BlockSpec((Di, D), lambda b, s: (0, 0))],
        out_specs=pl.BlockSpec((1, Tb, D), lambda b, s: (b, s, 0)),
        scratch_shapes=[pltpu.VMEM((8 + Tb, Di), jnp.float32),   # conv pad + block
                        pltpu.VMEM((Di, M), jnp.float32)],       # carried state S
        compiler_params=pltpu.CompilerParams(
            dimension_semantics=("parallel", "arbitrary"),
            vmem_limit_bytes=_vmem_limit()),
    )(xg, conv_w, w_cat, w_i2, out_norm_w.reshape(1, Di), w_out)


# ============================================================================
# 3) band-limited sliding-window shared-key attention.
#    grid = (B, T//Tq), batch parallel, seq arbitrary.  qkv is DMA'd once; the
#    previous block's (roped) shared-K / V tail (only the last Wp rows, the
#    only ones that can ever be unmasked) is carried in bf16 VMEM scratch.
#    RoPE tables are built once per step; all query heads share one score
#    matmul against the shared key.
# ============================================================================
def _swsk_attn_kernel(scale, window, H, hd, rope_base, Wp,
                      qkv_ref, o_ref, kprev_s, vprev_s):
    si = pl.program_id(1)
    Tq = qkv_ref.shape[1]
    Hhd = H * hd
    half = hd // 2

    blk = qkv_ref[0].astype(jnp.float32)                      # (Tq, 2*H*hd + hd)
    q_all = blk[:, :Hhd]
    k_cur = blk[:, Hhd:Hhd + hd]                              # shared key head
    v_cur = blk[:, Hhd + hd:Hhd + hd + Hhd]

    @pl.when(si == 0)
    def _():
        kprev_s[...] = jnp.zeros_like(kprev_s)
        vprev_s[...] = jnp.zeros_like(vprev_s)

    q_start = si * Tq

    # ---- RoPE tables once per step (shared by all q heads and the key) -------
    pos = (q_start + lax.broadcasted_iota(jnp.int32, (Tq, half), 0)).astype(jnp.float32)
    fidx = lax.broadcasted_iota(jnp.int32, (Tq, half), 1).astype(jnp.float32)
    inv_freq = jnp.exp(fidx * (-math.log(rope_base) / half))
    ang = pos * inv_freq
    cos = jnp.cos(ang)
    sin = jnp.sin(ang)

    def rot(xh):
        x1 = xh[:, :half]
        x2 = xh[:, half:]
        return jnp.concatenate([x1 * cos - x2 * sin, x2 * cos + x1 * sin], axis=-1)

    k_cur_r = rot(k_cur)
    # fold all query heads into one score matmul (key is shared across heads)
    q_stack = jnp.concatenate([rot(q_all[:, h * hd:(h + 1) * hd]) * scale
                               for h in range(H)], axis=0)    # (H*Tq, hd)
    qb = q_stack.astype(jnp.bfloat16)

    s_c = lax.dot_general(qb, k_cur_r.astype(jnp.bfloat16),
                          (((1,), (1,)), ((), ())),
                          preferred_element_type=jnp.float32)  # (H*Tq, Tq)

    row = lax.broadcasted_iota(jnp.int32, (Tq, Tq), 0)
    col = lax.broadcasted_iota(jnp.int32, (Tq, Tq), 1)
    ig = q_start + row
    jc = q_start + col
    bias_c = jnp.where((jc <= ig) & (jc > ig - window), 0.0, -1e30).astype(jnp.float32)
    s_c = s_c + jnp.concatenate([bias_c] * H, axis=0)
    m_row = jnp.max(s_c, axis=-1, keepdims=True)

    if window > 1:
        # band-limited previous-block contribution (last Wp carried KV rows)
        s_p = lax.dot_general(qb, kprev_s[...], (((1,), (1,)), ((), ())),
                              preferred_element_type=jnp.float32)  # (H*Tq, Wp)
        rowp = lax.broadcasted_iota(jnp.int32, (Tq, Wp), 0)
        colp = lax.broadcasted_iota(jnp.int32, (Tq, Wp), 1)
        igp = q_start + rowp
        jp = q_start - Wp + colp
        bias_p = jnp.where((jp > igp - window) & (jp >= 0), 0.0, -1e30).astype(jnp.float32)
        s_p = s_p + jnp.concatenate([bias_p] * H, axis=0)
        m_row = jnp.maximum(m_row, jnp.max(s_p, axis=-1, keepdims=True))
        p_p = jnp.exp(s_p - m_row)
        denom_p = jnp.sum(p_p, axis=-1, keepdims=True)

    p_c = jnp.exp(s_c - m_row)
    denom = jnp.sum(p_c, axis=-1, keepdims=True)
    if window > 1:
        denom = denom + denom_p
    inv = 1.0 / denom                                          # exact (parity)

    vcb = v_cur.astype(jnp.bfloat16)
    outs = []
    for h in range(H):
        r0 = h * Tq
        ctx = jnp.dot(p_c[r0:r0 + Tq, :].astype(jnp.bfloat16),
                      vcb[:, h * hd:(h + 1) * hd],
                      preferred_element_type=jnp.float32)
        if window > 1:
            ctx = ctx + jnp.dot(p_p[r0:r0 + Tq, :].astype(jnp.bfloat16),
                                vprev_s[:, h * hd:(h + 1) * hd],
                                preferred_element_type=jnp.float32)
        outs.append(ctx * inv[r0:r0 + Tq, :])
    o_ref[0] = jnp.concatenate(outs, axis=-1).astype(o_ref.dtype)

    # carry the (already roped) tail of this block's shared K and V forward
    if window > 1:
        kprev_s[...] = k_cur_r[Tq - Wp:, :].astype(kprev_s.dtype)
        vprev_s[...] = v_cur[Tq - Wp:, :].astype(vprev_s.dtype)


def swsk_attention(qkv, H, hd, window, rope_base, out_dtype):
    B, T, P = qkv.shape
    Tq = min(T, 128)
    assert T % Tq == 0 and Tq % 8 == 0 and window <= Tq
    nq = T // Tq
    Wp = 8 * pl.cdiv(max(window - 1, 1), 8)
    assert Wp <= Tq
    scale = 1.0 / math.sqrt(hd)
    return pl.pallas_call(
        functools.partial(_swsk_attn_kernel, scale, window, H, hd, rope_base, Wp),
        out_shape=jax.ShapeDtypeStruct((B, T, H * hd), out_dtype),
        grid=(B, nq),
        in_specs=[pl.BlockSpec((1, Tq, P), lambda b, q: (b, q, 0))],
        out_specs=pl.BlockSpec((1, Tq, H * hd), lambda b, q: (b, q, 0)),
        scratch_shapes=[pltpu.VMEM((Wp, hd), jnp.bfloat16),
                        pltpu.VMEM((Wp, H * hd), jnp.bfloat16)],
        compiler_params=pltpu.CompilerParams(
            dimension_semantics=("parallel", "arbitrary"),
            vmem_limit_bytes=_vmem_limit()),
    )(qkv)


# ============================================================================
# 4) attention out-proj + residual add + ffn_norm (prenorm=False) + SwiGLU GLU
#    with a single concatenated, lane-dense gate|up weight.
# ============================================================================
def _attnout_norm_glu_kernel(eps, Fp, ctx_ref, wo_ref, res_ref, w_ref,
                             wgu_ref, wd_ref, o_ref):
    attn_out = jnp.dot(ctx_ref[...].astype(jnp.bfloat16), wo_ref[...],
                       preferred_element_type=jnp.float32)
    xr = attn_out + res_ref[...]
    var = jnp.mean(xr * xr, axis=-1, keepdims=True)
    normed = (xr * lax.rsqrt(var + eps) * w_ref[...]).astype(jnp.bfloat16)
    gu = jnp.dot(normed, wgu_ref[...], preferred_element_type=jnp.float32)
    g = gu[:, :Fp]
    u = gu[:, Fp:]
    h = (g * jax.nn.sigmoid(g)) * u                           # SwiGLU (pad cols -> 0)
    o_ref[...] = jnp.dot(h.astype(jnp.bfloat16), wd_ref[...],
                         preferred_element_type=jnp.float32).astype(o_ref.dtype)


def attnout_norm_glu(ctx, w_o, residual, norm_w, w_gu, w_down, eps, out_dtype):
    B, T, C = ctx.shape
    R = B * T
    D = w_o.shape[1]
    Fp = w_gu.shape[1] // 2
    rt = _row_tile(R)
    assert R % rt == 0
    out = pl.pallas_call(
        functools.partial(_attnout_norm_glu_kernel, eps, Fp),
        out_shape=jax.ShapeDtypeStruct((R, D), out_dtype),
        grid=(R // rt,),
        in_specs=[pl.BlockSpec((rt, C), lambda i: (i, 0)),
                  pl.BlockSpec((C, D), lambda i: (0, 0)),
                  pl.BlockSpec((rt, D), lambda i: (i, 0)),
                  pl.BlockSpec((1, D), lambda i: (0, 0)),
                  pl.BlockSpec((D, 2 * Fp), lambda i: (0, 0)),
                  pl.BlockSpec((Fp, D), lambda i: (0, 0))],
        out_specs=pl.BlockSpec((rt, D), lambda i: (i, 0)),
        compiler_params=pltpu.CompilerParams(dimension_semantics=("parallel",),
                                             vmem_limit_bytes=_vmem_limit()),
    )(ctx.reshape(R, C), w_o, residual.reshape(R, D).astype(jnp.float32),
      norm_w.reshape(1, D), w_gu, w_down)
    return out.reshape(B, T, D)


# ============================================================================
# Block forward + parameter init.
# ============================================================================
def rodimus_block_forward(params, hidden, residual=None, cfg=None):
    act_dtype = hidden.dtype
    eps = cfg["eps"]
    # mixer_norm (prenorm=True) fused with the mixer input projection
    xg, residual = add_norm_proj(hidden, residual, params["mixer_norm_w"],
                                 params["mixer"]["w_in"], eps, act_dtype)
    hidden = rodimus_mixer(xg, params["mixer"]["conv_w"], params["mixer"]["w_cat"],
                           params["mixer"]["w_i2"], params["mixer"]["out_norm_w"],
                           params["mixer"]["w_out"], eps, cfg["mem_size"],
                           cfg["scan_chunk"], act_dtype)
    # attn_norm (prenorm=True) fused with the concatenated QKV projection
    qkv, residual = add_norm_proj(hidden, residual, params["attn_norm_w"],
                                  params["attn"]["w_qkv"], eps, act_dtype)
    ctx = swsk_attention(qkv, cfg["num_heads"], cfg["head_dim"], cfg["window"],
                         cfg["rope_base"], act_dtype)
    # attn out-proj + residual add + ffn_norm (prenorm=False) + GLU
    hidden = attnout_norm_glu(ctx, params["attn"]["w_o"], residual,
                              params["ffn_norm_w"], params["ffn"]["w_gu"],
                              params["ffn"]["w_down"], eps, act_dtype)
    # past_key_values path omitted (use_cache=False)
    return hidden, residual, None


def _lin(key, fan_in, fan_out):
    return jax.random.normal(key, (fan_in, fan_out), jnp.float32) / math.sqrt(fan_in)


def init_params(key, cfg):
    D, Di, M, r = cfg["d_model"], cfg["d_inner"], cfg["mem_size"], cfg["low_rank"]
    H, hd, F, K = cfg["num_heads"], cfg["head_dim"], cfg["ffn_hidden"], cfg["conv_kernel"]
    ks = jax.random.split(key, 16)
    bf16 = jnp.bfloat16
    # concatenated DDTS gate projection [k | g | i_lowrank | tau], zero-padded
    # up to a multiple of 128 lanes (one matmul instead of four).
    w_cat = jnp.concatenate([_lin(ks[2], Di, M),
                             _lin(ks[3], Di, M),
                             _lin(ks[5], Di, r),
                             _lin(ks[4], Di, 1)], axis=1)
    ncat = 2 * M + r + 1
    ncat_pad = 128 * pl.cdiv(ncat, 128)
    w_cat = jnp.pad(w_cat, ((0, 0), (0, ncat_pad - ncat))).astype(bf16)
    # concatenated attention projection [q | k_shared | v]
    w_qkv = jnp.concatenate([_lin(ks[8], D, H * hd),
                             _lin(ks[9], D, hd),
                             _lin(ks[10], D, H * hd)], axis=1).astype(bf16)
    # FFN gate|up concatenated and zero-padded to 128-lane halves (exact, since
    # w_down's matching rows are zero as well).
    Fp = 128 * pl.cdiv(F, 128)
    wg = _lin(ks[12], D, F)
    wu = _lin(ks[13], D, F)
    wd = _lin(ks[14], F, D)
    w_gu = jnp.concatenate([jnp.pad(wg, ((0, 0), (0, Fp - F))),
                            jnp.pad(wu, ((0, 0), (0, Fp - F)))], axis=1).astype(bf16)
    w_down = jnp.pad(wd, ((0, Fp - F), (0, 0))).astype(bf16)
    return {
        "mixer_norm_w": jnp.ones((D,), jnp.float32),
        "attn_norm_w": jnp.ones((D,), jnp.float32),
        "ffn_norm_w": jnp.ones((D,), jnp.float32),
        "mixer": {
            "w_in": _lin(ks[0], D, 2 * Di).astype(bf16),
            "conv_w": jax.random.normal(ks[1], (K, Di), jnp.float32) / math.sqrt(K),
            "w_cat": w_cat,
            "w_i2": _lin(ks[6], r, Di).astype(bf16),
            "out_norm_w": jnp.ones((Di,), jnp.float32),
            "w_out": _lin(ks[7], Di, D).astype(bf16),
        },
        "attn": {
            "w_qkv": w_qkv,
            "w_o": _lin(ks[11], H * hd, D).astype(bf16),
        },
        "ffn": {
            "w_gu": w_gu,
            "w_down": w_down,
        },
    }


if __name__ == "__main__":
    # block_type='rodimus_plus', d_model=64, expand_ratio=2, mem_size=64,
    # attn_cfg={'num_heads': 2}, ffn_expand_ratio=4/3 (hidden rounded to x8),
    # dropout=0, use_cache=False.
    cfg = dict(
        d_model=64, d_inner=128, mem_size=64, low_rank=16, conv_kernel=4,
        num_heads=2, head_dim=32, window=4,
        ffn_hidden=8 * math.ceil(64 * (4.0 / 3.0) / 8), eps=1e-5,
        rope_base=10000.0, scan_chunk=64,
    )
    B, T = 2, 8
    key = jax.random.PRNGKey(0)
    pkey, xkey = jax.random.split(key)
    params = init_params(pkey, cfg)
    hidden = jax.random.normal(xkey, (B, T, cfg["d_model"]),
                               jnp.float32).astype(jnp.bfloat16)

    out, residual, past_kv = rodimus_block_forward(params, hidden,
                                                   residual=None, cfg=cfg)
    out = jax.block_until_ready(out)
    residual = jax.block_until_ready(residual)

    assert out.shape == (B, T, cfg["d_model"])
    assert out.dtype == hidden.dtype
    assert residual.shape == (B, T, cfg["d_model"])
    assert residual.dtype == jnp.float32
    assert bool(jnp.all(jnp.isfinite(out.astype(jnp.float32))))
    assert bool(jnp.all(jnp.isfinite(residual)))
    print("KERNEL_OK")
</pallas_src>

<mosaic_0001>
module attributes {stable_mosaic.version = 11 : i64} {
  func.func @_norm_proj_kernel(%arg0: i32, %arg1: memref<16x64xbf16, #tpu.memory_space<vmem>>, %arg2: memref<1x64xf32, #tpu.memory_space<vmem>>, %arg3: memref<64x256xbf16, #tpu.memory_space<vmem>>, %arg4: memref<16x256xbf16, #tpu.memory_space<vmem>>, %arg5: memref<16x64xf32, #tpu.memory_space<vmem>>) attributes {dimension_semantics = [#tpu.dimension_semantics<parallel>], iteration_bounds = array<i64: 1>, scalar_prefetch = 0 : i64, scratch_operands = 0 : i64, tpu.core_type = #tpu.core_type<tc>, window_params = [{transform_indices = @transform_0, window_bounds = array<i64: 16, 64>}, {pipeline_mode = #tpu.pipeline_mode<synchronous>, transform_indices = @transform_1, window_bounds = array<i64: 1, 64>}, {pipeline_mode = #tpu.pipeline_mode<synchronous>, transform_indices = @transform_2, window_bounds = array<i64: 64, 256>}, {transform_indices = @transform_3, window_bounds = array<i64: 16, 256>}, {transform_indices = @transform_4, window_bounds = array<i64: 16, 64>}]} {
    %c0 = arith.constant 0 : index
    %c0_0 = arith.constant 0 : index
    %0 = vector.load %arg1[%c0, %c0_0] : memref<16x64xbf16, #tpu.memory_space<vmem>>, vector<16x64xbf16>
    %1 = arith.extf %0 : vector<16x64xbf16> to vector<16x64xf32>
    %c0_1 = arith.constant 0 : index
    %c0_2 = arith.constant 0 : index
    %2 = vector.load %arg5[%c0_1, %c0_2] : memref<16x64xf32, #tpu.memory_space<vmem>>, vector<16x64xf32>
    tpu.vector_store %arg5[%c0_1, %c0_2], %1 {strides = array<i32>} : memref<16x64xf32, #tpu.memory_space<vmem>>, vector<16x64xf32>,
    %3 = arith.mulf %1, %1 : vector<16x64xf32>
    %cst = arith.constant dense<0.000000e+00> : vector<16xf32>
    %4 = vector.multi_reduction <add>, %3, %cst [1] : vector<16x64xf32> to vector<16xf32>
    %5 = vector.shape_cast %4 : vector<16xf32> to vector<16x1xf32>
    %cst_3 = arith.constant 6.400000e+01 : f32
    %6 = vector.broadcast %cst_3 : f32 to vector<16x1xf32>
    %7 = arith.divf %5, %6 : vector<16x1xf32>
    %cst_4 = arith.constant 9.99999974E-6 : f32
    %8 = vector.broadcast %cst_4 : f32 to vector<16x1xf32>
    %9 = arith.addf %7, %8 : vector<16x1xf32>
    %10 = math.rsqrt %9 : vector<16x1xf32>
    %11 = vector.broadcast %10 : vector<16x1xf32> to vector<16x64xf32>
    %12 = arith.mulf %1, %11 : vector<16x64xf32>
    %c0_5 = arith.constant 0 : index
    %c0_6 = arith.constant 0 : index
    %13 = vector.load %arg2[%c0_5, %c0_6] : memref<1x64xf32, #tpu.memory_space<vmem>>, vector<1x64xf32>
    %14 = vector.broadcast %13 : vector<1x64xf32> to vector<16x64xf32>
    %15 = arith.mulf %12, %14 : vector<16x64xf32>
    %16 = arith.truncf %15 : vector<16x64xf32> to vector<16x64xbf16>
    %c0_7 = arith.constant 0 : index
    %c0_8 = arith.constant 0 : index
    %17 = vector.load %arg3[%c0_7, %c0_8] : memref<64x256xbf16, #tpu.memory_space<vmem>>, vector<64x256xbf16>
    %cst_9 = arith.constant dense<0.000000e+00> : vector<16x256xf32>
    %18 = tpu.matmul %16, %17, %cst_9 {dimension_numbers = #tpu.dot_dimension_numbers<[1], [0], [0], [1], [0, 0, 1, 1], [], []>} : vector<16x64xbf16>, vector<64x256xbf16>, vector<16x256xf32> -> vector<16x256xf32>
    %19 = arith.truncf %18 : vector<16x256xf32> to vector<16x256xbf16>
    %c0_10 = arith.constant 0 : index
    %c0_11 = arith.constant 0 : index
    %20 = vector.load %arg4[%c0_10, %c0_11] : memref<16x256xbf16, #tpu.memory_space<vmem>>, vector<16x256xbf16>
    tpu.vector_store %arg4[%c0_10, %c0_11], %19 {strides = array<i32>} : memref<16x256xbf16, #tpu.memory_space<vmem>>, vector<16x256xbf16>,
    return
  }
  func.func @transform_0(%arg0: i32) -> (i32, i32) {
    %c0_i32 = arith.constant 0 : i32
    %c0_i32_0 = arith.constant 0 : i32
    return %arg0, %c0_i32 : i32, i32
  }
  func.func @transform_1(%arg0: i32) -> (i32, i32) {
    %c0_i32 = arith.constant 0 : i32
    %c0_i32_0 = arith.constant 0 : i32
    %c0_i32_1 = arith.constant 0 : i32
    return %c0_i32, %c0_i32_0 : i32, i32
  }
  func.func @transform_2(%arg0: i32) -> (i32, i32) {
    %c0_i32 = arith.constant 0 : i32
    %c0_i32_0 = arith.constant 0 : i32
    %c0_i32_1 = arith.constant 0 : i32
    return %c0_i32, %c0_i32_0 : i32, i32
  }
  func.func @transform_3(%arg0: i32) -> (i32, i32) {
    %c0_i32 = arith.constant 0 : i32
    %c0_i32_0 = arith.constant 0 : i32
    return %arg0, %c0_i32 : i32, i32
  }
  func.func @transform_4(%arg0: i32) -> (i32, i32) {
    %c0_i32 = arith.constant 0 : i32
    %c0_i32_0 = arith.constant 0 : i32
    return %arg0, %c0_i32 : i32, i32
  }
}

</mosaic_0001>

<bundles_post_ra>
// kernel: tpu_custom_call.1
= control target key start
LH: loop header
LB: loop body
LE: loop exit
PB: predicated region body
PF: predicated region fallthrough
CT: control target
= control target key end

     0   :  { %10 = vsyncpa [#allocation3], 0  ;;  %s417_s0 = inlined_call_operand.hbm [shape: bf16[16,64], index: 0, kind: input, shape index: {}]   ;;  %s418_s1 = inlined_call_operand.vmem [shape: f32[1,64], index: 1, kind: input, shape index: {}]   ;;  %s419_s2 = inlined_call_operand.hbm [shape: bf16[64,256], index: 2, kind: input, shape index: {}]   ;;  %s420_s3 = inlined_call_operand.hbm [shape: bf16[16,256], index: 3, kind: output, shape index: {0}]   ;;  %s421_s4 = inlined_call_operand.hbm [shape: f32[16,64], index: 4, kind: output, shape index: {1}]  }
   0x1   :  { %11 = vsyncpa [#allocation6], 0 }
   0x2   :  { %12 = vsyncpa [#allocation4], 0 }
   0x3   :  { %13 = vsyncpa [#allocation9], 0  ;;  %s354_s15 = smov [#allocation2]  }
   0x4   :  { %s19_s16 = sshll.u32 %s354_s15, 4  ;;  %s20_s16 = int_to_ptr.vmem [resolvable:$true] %s19_s16 }
   0x5   :  { %s274_s17 = scalar_lea.vmem %s20_s16, 128  ;;  %p279_p1 = scmp.lt.s32.totalorder %s20_s16, %s20_s16 }
   0x6   :  { %p275_p0 = scmp.ne.s32.totalorder %s20_s16, %s274_s17  ;;  %p280_p2 = scmp.lt.s32.totalorder %s274_s17, %s274_s17 }
   0x8   :  { %p281_p3 = por %p280_p2, %p279_p1 }
   0xa   :  { %p282_p4 = pnand %p281_p3, %p275_p0 }
   0xc   :  { %285 = shalt.err (!%p282_p4)
}
   0xd   :  { %s355_s18 = smov 64   ;;  %s356_s19 = smov 4  }
   0xe   :  { %25 = dma.hbm_to_vmem [thread:$0]  %s417_s0, 128, %s20_s16, [#allocation3], %s355_s18, %s355_s18, %s356_s19  }
   0xf   :  { %s357_s22 = smov [#allocation5]  }
  0x10   :  { %s33_s23 = sshll.u32 %s357_s22, 4  ;;  %s34_s23 = int_to_ptr.vmem [resolvable:$true] %s33_s23 }
  0x11   :  { %s294_s24 = scalar_lea.vmem %s34_s23, 1024  ;;  %p299_p6 = scmp.lt.s32.totalorder %s34_s23, %s34_s23 }
  0x12   :  { %p295_p5 = scmp.ne.s32.totalorder %s34_s23, %s294_s24  ;;  %p300_p7 = scmp.lt.s32.totalorder %s294_s24, %s294_s24 }
  0x14   :  { %p301_p8 = por %p300_p7, %p299_p6 }
  0x16   :  { %p302_p9 = pnand %p301_p8, %p295_p5 }
  0x18   :  { %305 = shalt.err (!%p302_p9)
}
  0x19   :  { %s358_s25 = smov 128   ;;  %s359_s26 = smov 8  }
  0x1a   :  { %39 = dma.hbm_to_vmem [thread:$0]  %s419_s2, 1024, %s34_s23, [#allocation6], %s358_s25, %s358_s25, %s359_s26  }
  0x1b   :  { %346 = dma.done.wait [#allocation3], 128  }
  0x1c   :  { %347 = vsyncadd [#allocation3], 4294967168 }
  0x1d   :  { %348 = dma.done.wait [#allocation6], 1024  }
  0x1e   :  { %349 = vsyncadd [#allocation6], 4294966272  ;;  %v238_v0 = vld [vmem:[#allocation2] sm:$0xff]   ;;  %vm51_vm0 = vcmask 523264   ;;  %v253_v9 = vld [vmem:[#allocation5 + $0x24] ss:$8 sps:$4 sm:$0xff]  }
  0x1f   :  { %v239_v1 = vunpack.c.l.bf16 %v238_v0  ;;  %v240_v2 = vunpack.c.h.bf16 %v238_v0  ;;  %v250_v7 = vld [vmem:[#allocation5 + $0x34] ss:$8 sps:$4 sm:$0xff]   ;;  %v252_v8 = vld [vmem:[#allocation5 + $0x30] ss:$8 sps:$4 sm:$0xff]   ;;  %v255_v10 = vld [vmem:[#allocation5 + $0x20] ss:$8 sps:$4 sm:$0xff]  }
  0x20   :  { %140 = vmatprep.subr.bf16.mxu0 %v250_v7  ;;  %v360_v11 = vmov 0   ;;  %v256_v12 = vld [vmem:[#allocation5 + $0x14] ss:$8 sps:$4 sm:$0xff]   ;;  %v258_v13 = vld [vmem:[#allocation5 + $0x10] ss:$8 sps:$4 sm:$0xff]   ;;  %s361_s29 = smov [#allocation8]  }
  0x21   :  { %v54_v3 = vmul.f32 %v239_v1, %v239_v1  ;;  %52 = vst.msk [vmem:[#allocation8] sm:$0xff] %vm51_vm0, %v239_v1  ;;  %v55_v4 = vmul.f32 %v240_v2, %v240_v2  ;;  %53 = vst.msk [vmem:[#allocation8 + $0x8] sm:$0xff] %vm51_vm0, %v240_v2  ;;  %141 = vmatpush1.bf16.msra.mxu0 %v252_v8  ;;  %164 = vmatprep.mubr.bf16.mxu0 %v360_v11  ;;  %v259_v14 = vld [vmem:[#allocation5 + $0x4] ss:$8 sps:$4 sm:$0xff]   ;;  %v261_v15 = vld [vmem:[#allocation5] ss:$8 sps:$4 sm:$0xff]  }
  0x22   :  { %142 = vmatprep.subr.bf16.mxu0 %v253_v9  ;;  %v223_v25 = vld [vmem:[%s418_s1] ss:$0 sm:$0xff]  ;;  %s206_s30 = sshll.u32 %s361_s29, 4  ;;  %s207_s30 = int_to_ptr.vmem [resolvable:$true] %s206_s30 }
  0x23   :  { %v56_v5 = vsel %vm51_vm0, %v54_v3, 0.0  ;;  %v59_v6 = vsel %vm51_vm0, %v55_v4, 0.0  ;;  %s306_s5 = scalar_lea.vmem %s207_s30, 256  ;;  %p311_p11 = scmp.lt.s32.totalorder %s207_s30, %s207_s30 }
  0x24   :  { %57 = vadd.xlane.f32.xlu0 %v56_v5  ;;  %p307_p10 = scmp.ne.s32.totalorder %s207_s30, %s306_s5  ;;  %p312_p12 = scmp.lt.s32.totalorder %s306_s5, %s306_s5 }
  0x25   :  { %143 = vmatpush1.bf16.msra.mxu0 %v255_v10 }
  0x26   :  { %144 = vmatprep.subr.bf16.mxu0 %v256_v12  ;;  %p313_p13 = por %p312_p12, %p311_p11 }
  0x28   :  { %60 = vadd.xlane.f32.xlu0 %v59_v6  ;;  %p314_p0 = pnand %p313_p13, %p307_p10 }
  0x29   :  { %145 = vmatpush1.bf16.msra.mxu0 %v258_v13 }
  0x2a   :  { %146 = vmatprep.subr.bf16.mxu0 %v259_v14 }
  0x2d   :  { %147 = vmatpush1.bf16.msra.mxu0 %v261_v15 }
  0xad   :  { %v58_v16 = vpop.xlane.xlu0 %57 }
  0xae   :  { %v63_v17 = vmul.f32 0.015625, %v58_v16 }
  0xb0   :  { %v65_v18 = vadd.f32 1e-05, %v63_v17 }
  0xb1   :  { %v61_v19 = vpop.xlane.xlu0 %60 }
  0xb2   :  { %262 = vrsqrt.f32 %v65_v18  ;;  %v64_v20 = vmul.f32 0.015625, %v61_v19 }
  0xb4   :  { %v66_v21 = vadd.f32 1e-05, %v64_v20 }
  0xb6   :  { %264 = vrsqrt.f32 %v66_v21 }
  0xbf   :  { %v263_v22 = vpop.eup %262 }
  0xc0   :  { %v69_v23 = vmul.f32 %v263_v22, %v239_v1 }
  0xc2   :  { %v78_v27 = vmul.f32 %v223_v25, %v69_v23 }
  0xc3   :  { %v265_v24 = vpop.eup %264 }
  0xc4   :  { %v70_v26 = vmul.f32 %v265_v24, %v240_v2 }
  0xc6   :  { %v79_v28 = vmul.f32 %v223_v25, %v70_v26 }
  0xc8   :  { %v80_v29 = vpack.c.bf16 %v79_v28, %v78_v27 }
  0xca   :  { %232 = vmatmul.mubr.msk.bf16.vlgmr.msra.gmra.mxu0 %vm51_vm0, %v80_v29 }
  0xcb   :  { %317 = shalt.err (!%p314_p0)
}
  0xcc   :  { %212 = dma.vmem_to_hbm [thread:$0]  %s207_s30, 256, %s421_s4, [#allocation9], %s358_s25, %s358_s25, %s359_s26  }
  0xcd   :  { %s362_s7 = smov [#allocation7]  }
  0xce   :  { %s194_s8 = sshll.u32 %s362_s7, 4  ;;  %s195_s8 = int_to_ptr.vmem [resolvable:$true] %s194_s8 }
  0xcf   :  { %s326_s9 = scalar_lea.vmem %s195_s8, 256  ;;  %p331_p2 = scmp.lt.s32.totalorder %s195_s8, %s195_s8 }
  0xd0   :  { %p327_p1 = scmp.ne.s32.totalorder %s195_s8, %s326_s9  ;;  %p332_p3 = scmp.lt.s32.totalorder %s326_s9, %s326_s9 }
  0xd2   :  { %p333_p4 = por %p332_p3, %p331_p2 }
  0xd4   :  { %p334_p5 = pnand %p333_p4, %p327_p1 }
 0x18a   :  { %v166_v30 = vpop.f32.mrf.mxu0 }
 0x18c   :  { %v168_v31 = vpop.f32.mrf.mxu0 }
 0x18d   :  { %v235_v32 = vpack.c.bf16 %v168_v31, %v166_v30 }
 0x18e   :  { %v170_v33 = vpop.f32.mrf.mxu0 }
 0x18f   :  { %187 = vst [vmem:[#allocation7] sm:$0xff] %v235_v32 }
 0x190   :  { %v172_v34 = vpop.f32.mrf.mxu0 }
 0x191   :  { %v236_v35 = vpack.c.bf16 %v172_v34, %v170_v33 }
 0x193   :  { %188 = vst [vmem:[#allocation7 + $0x8] sm:$0xff] %v236_v35 }
 0x194   :  { %337 = shalt.err (!%p334_p5)
}
 0x195   :  { %200 = dma.vmem_to_hbm [thread:$0]  %s195_s8, 256, %s420_s3, [#allocation4], %s358_s25, %s358_s25, %s359_s26  }
 0x196   :  { %350 = dma.done.wait [#allocation4], 256  }
 0x197   :  { %351 = vsyncadd [#allocation4], 4294967040 }
 0x198   :  { %352 = dma.done.wait [#allocation9], 256  }
 0x199   :  { %353 = vsyncadd [#allocation9], 4294967040 }
 0x19a   :  { %219 = vsyncpa [#allocation3], 1 }
 0x19b   :  { %220 = vsyncpa [#allocation6], 1 }
 0x19c   :  { %221 = vsyncpa [#allocation4], 1 }
 0x19d   :  { %222 = vsyncpa [#allocation9], 1 }

</bundles_post_ra>
